<compile_context>
chip_gen: v6e
topology: v6e:2x2x1
jax: 0.10.0
libtpu: 0.0.40
codegen_flags: <defaults>
</compile_context>

<pallas_src>
import math
import functools

import jax
import jax.numpy as jnp
from jax.experimental import pallas as pl
from jax.experimental.pallas import tpu as pltpu


# ----------------------------- config (mirrors cfg.*) -----------------------
class Cfg:
    parts = 'body'
    focal = (5000.0, 5000.0)
    princpt = (96.0, 128.0)
    input_img_shape = (256, 192)     # (H, W)
    output_hm_shape = (8, 8, 8)      # (D, H, W)
    camera_3d_size = 2.5


CFG = Cfg()

SMPL_ORIG_JOINT_NUM = 24     # smpl.orig_joint_num
SMPL_JOINT_NUM = 30          # rows of smpl.joint_regressor
SMPL_ROOT_JOINT_IDX = 0
NUM_VERTS = 128              # synthetic vertex count (real SMPL: 6890)
FEAT_DIM = 64
POS_JOINTS = 30              # joints predicted by position_net
ROT_OUT_DIM = 6 + 21 * 6 + 10 + 3   # root6d | body6d | shape | cam  (=145)


# --------------------------------- kernels -----------------------------------
def _head_kernel(img_ref, wb_ref, wp_ref, wra_ref, wrb_ref, br_ref,
                 ji_ref, rot_ref, cam_ref, acc_ref, *,
                 inv_hw, hm_size, k_value):
    """Fused backbone-GAP + position_net + rotation_net + get_camera_trans.

    Grid axis 0 iterates over spatial tiles of the image; partial sums are
    accumulated into `acc_ref` (VMEM). On the last tile the tiny head matmuls
    run entirely out of VMEM and the three outputs are written once.
    """
    k = pl.program_id(0)

    @pl.when(k == 0)
    def _():
        acc_ref[...] = jnp.zeros_like(acc_ref)

    # (B, 3, S_TILE) -> partial channel sums (B, 3)
    acc_ref[...] += jnp.sum(img_ref[...], axis=-1)

    @pl.when(k == pl.num_programs(0) - 1)
    def _():
        # global average pool (zero-padded lanes don't bias the sum; we
        # divide by the true H*W), then linear backbone stub.
        feat = jnp.dot(acc_ref[...] * inv_hw, wb_ref[...],
                       preferred_element_type=jnp.float32)          # (B, 64)
        # position_net stub: linear + sigmoid scaled to heatmap coords.
        ji = jax.nn.sigmoid(
            jnp.dot(feat, wp_ref[...],
                    preferred_element_type=jnp.float32)) * hm_size  # (B, 90)
        ji_ref[...] = ji
        # rotation_net stub: rot_out = feat @ Wa + joint_img @ Wb + b
        # (joint_img is detached in the reference; identical values in test).
        rot = (jnp.dot(feat, wra_ref[...], preferred_element_type=jnp.float32)
               + jnp.dot(ji, wrb_ref[...], preferred_element_type=jnp.float32)
               + br_ref[...])                                        # (B, 145)
        rot_ref[...] = rot
        # get_camera_trans: t_xy passthrough, t_z = k * sigmoid(gamma)
        cam = rot[:, ROT_OUT_DIM - 3:ROT_OUT_DIM]                    # (B, 3)
        col = jax.lax.broadcasted_iota(jnp.int32, cam.shape, 1)
        cam_ref[...] = jnp.where(col < 2, cam, k_value * jax.nn.sigmoid(cam))


def _body_kernel(smpl_in_ref, dirs_ref, tmpl_ref, jreg_ref, ct_ref,
                 mesh_ref, jp_ref, jcr_ref, *,
                 num_joints, focal, princpt, inp_shape, hm_shape, root_idx):
    """Fused SMPL blend + joint regression + perspective projection.

    All tensors stay flat / lane-grouped: mesh is (B, V*3), regressed joints
    are (B, 3*J) grouped as [x_0..x_{J-1} | y.. | z..], so x/y/z are cheap
    contiguous lane slices (no last-dim-3 blocks, no jnp.array constants).
    """
    J = num_joints
    # TODO(synk): real SMPL layer (LBS + pose-corrective blendshapes) not
    # reproduced; approximated with a linear shape/pose blend over a template.
    mesh = tmpl_ref[...] + jnp.dot(smpl_in_ref[...], dirs_ref[...],
                                   preferred_element_type=jnp.float32)  # (B, V*3)
    mesh_ref[...] = mesh

    # joint regression: one lane-dense matmul against the grouped-kron
    # expansion of smpl.joint_regressor (replaces the old grid=(B,) bmm).
    jg = jnp.dot(mesh, jreg_ref[...],
                 preferred_element_type=jnp.float32)                    # (B, 3*J)
    jx = jg[:, 0:J]
    jy = jg[:, J:2 * J]
    jz = jg[:, 2 * J:3 * J]

    tx = ct_ref[:, 0:1]
    ty = ct_ref[:, 1:2]
    tz = ct_ref[:, 2:3]

    den = jz + tz + 0.0001
    x = (jx + tx) / den * focal[0] + princpt[0]
    y = (jy + ty) / den * focal[1] + princpt[1]
    x = x / inp_shape[1] * hm_shape[2]
    y = y / inp_shape[0] * hm_shape[1]
    jp_ref[:, 0:J] = x
    jp_ref[:, J:2 * J] = y

    # root-relative joints (grouped [x|y|z]); stacked to (B,J,3) in wrapper.
    rx = jx[:, root_idx:root_idx + 1]
    ry = jy[:, root_idx:root_idx + 1]
    rz = jz[:, root_idx:root_idx + 1]
    jcr_ref[:, 0:J] = jx - rx
    jcr_ref[:, J:2 * J] = jy - ry
    jcr_ref[:, 2 * J:3 * J] = jz - rz


# ------------------------------- JAX glue ------------------------------------
def _rotmat_to_axis_angle(R):
    """Rotation matrix -> axis-angle via quaternion (stable near angle ~ pi)."""
    m00, m01, m02 = R[:, 0, 0], R[:, 0, 1], R[:, 0, 2]
    m10, m11, m12 = R[:, 1, 0], R[:, 1, 1], R[:, 1, 2]
    m20, m21, m22 = R[:, 2, 0], R[:, 2, 1], R[:, 2, 2]
    tr = m00 + m11 + m22

    def _sqrt(v):
        return jnp.sqrt(jnp.maximum(v, 1e-12))

    s0 = _sqrt(1.0 + tr)
    q0 = jnp.stack([0.5 * s0, 0.5 * (m21 - m12) / s0,
                    0.5 * (m02 - m20) / s0, 0.5 * (m10 - m01) / s0], axis=-1)
    s1 = _sqrt(1.0 + m00 - m11 - m22)
    q1 = jnp.stack([0.5 * (m21 - m12) / s1, 0.5 * s1,
                    0.5 * (m01 + m10) / s1, 0.5 * (m02 + m20) / s1], axis=-1)
    s2 = _sqrt(1.0 - m00 + m11 - m22)
    q2 = jnp.stack([0.5 * (m02 - m20) / s2, 0.5 * (m01 + m10) / s2,
                    0.5 * s2, 0.5 * (m12 + m21) / s2], axis=-1)
    s3 = _sqrt(1.0 - m00 - m11 + m22)
    q3 = jnp.stack([0.5 * (m10 - m01) / s3, 0.5 * (m02 + m20) / s3,
                    0.5 * (m12 + m21) / s3, 0.5 * s3], axis=-1)

    cond0 = (tr > 0.0)[:, None]
    cond1 = ((m00 >= m11) & (m00 >= m22))[:, None]
    cond2 = (m11 >= m22)[:, None]
    q = jnp.where(cond0, q0, jnp.where(cond1, q1, jnp.where(cond2, q2, q3)))
    q = q / jnp.linalg.norm(q, axis=-1, keepdims=True)
    q = jnp.where(q[:, :1] < 0.0, -q, q)          # keep angle in [0, pi]

    w = q[:, :1]
    v = q[:, 1:]
    sin_half = jnp.linalg.norm(v, axis=-1, keepdims=True)
    angle = 2.0 * jnp.arctan2(sin_half, w)
    axis = v / jnp.maximum(sin_half, 1e-8)
    return jnp.where(sin_half < 1e-6, 2.0 * v, axis * angle)


def rot6d_to_axis_angle(x6):
    """6D rotation -> axis-angle (plain-JAX glue; util is external to Model)."""
    x = x6.reshape(-1, 3, 2)
    a1, a2 = x[:, :, 0], x[:, :, 1]
    b1 = a1 / (jnp.linalg.norm(a1, axis=-1, keepdims=True) + 1e-8)
    a2p = a2 - jnp.sum(b1 * a2, axis=-1, keepdims=True) * b1
    b2 = a2p / (jnp.linalg.norm(a2p, axis=-1, keepdims=True) + 1e-8)
    b3 = jnp.cross(b1, b2)
    R = jnp.stack([b1, b2, b3], axis=-1)          # (N, 3, 3)
    return _rotmat_to_axis_angle(R)


def init_params(key):
    ks = jax.random.split(key, 7)
    # smpl.joint_regressor (stub), row-stochastic.
    reg = jax.nn.softmax(
        jax.random.normal(ks[5], (SMPL_JOINT_NUM, NUM_VERTS), jnp.float32),
        axis=-1)
    # Grouped-kron expansion: (V*3, 3*J) with columns [x_0..x_{J-1}|y..|z..],
    # so joint regression is one lane-dense matmul on the flat (B, V*3) mesh.
    jreg_grouped = jnp.einsum(
        'jv,cd->vcdj', reg, jnp.eye(3, dtype=jnp.float32)
    ).reshape(NUM_VERTS * 3, 3 * SMPL_JOINT_NUM)
    return {
        'w_backbone': jax.random.normal(ks[0], (3, FEAT_DIM), jnp.float32) * 0.1,
        'w_posnet': jax.random.normal(ks[1], (FEAT_DIM, POS_JOINTS * 3),
                                      jnp.float32) * 0.1,
        # rotation_net weight split into [feat | joint] blocks (no concat).
        'w_rot_feat': jax.random.normal(ks[2], (FEAT_DIM, ROT_OUT_DIM),
                                        jnp.float32) * 0.02,
        'w_rot_joint': jax.random.normal(ks[6], (POS_JOINTS * 3, ROT_OUT_DIM),
                                         jnp.float32) * 0.02,
        'b_rotnet': jnp.zeros((1, ROT_OUT_DIM), jnp.float32),
        'smpl_dirs': jax.random.normal(ks[3], (10 + 72, NUM_VERTS * 3),
                                       jnp.float32) * 0.01,
        'smpl_template': jax.random.normal(ks[4], (1, NUM_VERTS * 3),
                                           jnp.float32) * 0.2,
        'jreg_grouped': jreg_grouped,
    }


def model_forward(params, img):
    """Model.forward, parts='body', mode='test' — two fused Pallas kernels."""
    B, C, H, W = img.shape
    HW = H * W
    img_flat = img.reshape(B, C, HW).astype(jnp.float32)

    # Spatial tile for the GAP reduction: lane-dense, <= 8192 wide (fits the
    # default scoped-VMEM budget with double-buffering on v5e/v6e/v7x).
    s_tile = min(8192, ((HW + 127) // 128) * 128)
    hw_pad = ((HW + s_tile - 1) // s_tile) * s_tile
    if hw_pad != HW:
        # zero padding is sum-safe; the kernel divides by the true H*W.
        img_flat = jnp.pad(img_flat, ((0, 0), (0, 0), (0, hw_pad - HW)))
    n_s = hw_pad // s_tile

    k_value = math.sqrt(CFG.focal[0] * CFG.focal[1]
                        * CFG.camera_3d_size * CFG.camera_3d_size
                        / (CFG.input_img_shape[0] * CFG.input_img_shape[1]))

    # ---- fused head: backbone GAP + position_net + rotation_net + cam_trans
    joint_img_flat, rot_out, cam_trans = pl.pallas_call(
        functools.partial(_head_kernel,
                          inv_hw=1.0 / float(HW),
                          hm_size=float(CFG.output_hm_shape[2]),
                          k_value=float(k_value)),
        grid=(n_s,),
        in_specs=[
            pl.BlockSpec((B, C, s_tile), lambda k: (0, 0, k)),
            pl.BlockSpec((C, FEAT_DIM), lambda k: (0, 0)),
            pl.BlockSpec((FEAT_DIM, POS_JOINTS * 3), lambda k: (0, 0)),
            pl.BlockSpec((FEAT_DIM, ROT_OUT_DIM), lambda k: (0, 0)),
            pl.BlockSpec((POS_JOINTS * 3, ROT_OUT_DIM), lambda k: (0, 0)),
            pl.BlockSpec((1, ROT_OUT_DIM), lambda k: (0, 0)),
        ],
        out_specs=(
            pl.BlockSpec((B, POS_JOINTS * 3), lambda k: (0, 0)),
            pl.BlockSpec((B, ROT_OUT_DIM), lambda k: (0, 0)),
            pl.BlockSpec((B, 3), lambda k: (0, 0)),
        ),
        out_shape=(
            jax.ShapeDtypeStruct((B, POS_JOINTS * 3), jnp.float32),
            jax.ShapeDtypeStruct((B, ROT_OUT_DIM), jnp.float32),
            jax.ShapeDtypeStruct((B, 3), jnp.float32),
        ),
        scratch_shapes=[pltpu.VMEM((B, C), jnp.float32)],
        compiler_params=pltpu.CompilerParams(
            dimension_semantics=("arbitrary",)),   # spatial reduction axis
    )(img_flat, params['w_backbone'], params['w_posnet'],
      params['w_rot_feat'], params['w_rot_joint'], params['b_rotnet'])

    joint_img = joint_img_flat.reshape(B, POS_JOINTS, 3)

    root_pose_6d = rot_out[:, :6]
    pose_param_6d = rot_out[:, 6:6 + 21 * 6]
    shape_param = rot_out[:, 132:142]

    # ---- forward_rotation_net post-processing (plain-JAX glue) -------------
    root_pose = rot6d_to_axis_angle(root_pose_6d)                        # (B, 3)
    pose_param = rot6d_to_axis_angle(pose_param_6d.reshape(-1, 6)).reshape(B, -1)
    pose_param = jnp.concatenate(
        [pose_param, jnp.zeros((B, 2 * 3), jnp.float32)], axis=1)        # (B, 69)

    smpl_in = jnp.concatenate([shape_param, root_pose, pose_param], axis=1)  # (B, 82)

    # ---- fused SMPL blend + joint regression + projection ------------------
    J = SMPL_JOINT_NUM
    mesh_flat, jp_grouped, jcr_grouped = pl.pallas_call(
        functools.partial(_body_kernel,
                          num_joints=J,
                          focal=CFG.focal, princpt=CFG.princpt,
                          inp_shape=CFG.input_img_shape,
                          hm_shape=CFG.output_hm_shape,
                          root_idx=SMPL_ROOT_JOINT_IDX),
        out_shape=(
            jax.ShapeDtypeStruct((B, NUM_VERTS * 3), jnp.float32),
            jax.ShapeDtypeStruct((B, 2 * J), jnp.float32),
            jax.ShapeDtypeStruct((B, 3 * J), jnp.float32),
        ),
    )(smpl_in, params['smpl_dirs'], params['smpl_template'],
      params['jreg_grouped'], cam_trans)

    # Wrapper-side reshapes back to the reference (B, N, 3)/(B, N, 2) layouts.
    mesh_cam_out = mesh_flat.reshape(B, NUM_VERTS, 3) + cam_trans[:, None, :]
    joint_proj = jnp.stack([jp_grouped[:, :J], jp_grouped[:, J:]], axis=-1)
    joint_cam_rel = jnp.stack([jcr_grouped[:, :J],
                               jcr_grouped[:, J:2 * J],
                               jcr_grouped[:, 2 * J:]], axis=-1)

    smpl_body_pose = pose_param.reshape(-1, (SMPL_ORIG_JOINT_NUM - 1) * 3)
    smpl_pose = jnp.concatenate([root_pose, smpl_body_pose], axis=1)     # (B, 72)

    out = {
        'cam_trans': cam_trans,
        'img': img,
        'joint_img': joint_img,
        'smpl_mesh_cam': mesh_cam_out,
        'smpl_joint_proj': joint_proj,
        'smpl_pose': smpl_pose,
        'smpl_shape': shape_param,
        'smpl_joint_cam': joint_cam_rel,   # root-relative joints from get_coord
    }
    return out


if __name__ == "__main__":
    key = jax.random.PRNGKey(0)
    pkey, ikey = jax.random.split(key)
    params = init_params(pkey)
    img = jax.random.uniform(ikey, (2, 3, 16, 16), jnp.float32)   # NCHW like PyTorch
    out = jax.jit(model_forward)(params, img)
    jax.block_until_ready(out)
    print("KERNEL_OK")
</pallas_src>

<mosaic_0001>
module attributes {stable_mosaic.version = 11 : i64} {
  func.func @_head_kernel(%arg0: i32, %arg1: memref<2x3x256xf32, #tpu.memory_space<vmem>>, %arg2: memref<3x64xf32, #tpu.memory_space<vmem>>, %arg3: memref<64x90xf32, #tpu.memory_space<vmem>>, %arg4: memref<64x145xf32, #tpu.memory_space<vmem>>, %arg5: memref<90x145xf32, #tpu.memory_space<vmem>>, %arg6: memref<1x145xf32, #tpu.memory_space<vmem>>, %arg7: memref<2x90xf32, #tpu.memory_space<vmem>>, %arg8: memref<2x145xf32, #tpu.memory_space<vmem>>, %arg9: memref<2x3xf32, #tpu.memory_space<vmem>>, %arg10: memref<2x3xf32, #tpu.memory_space<vmem>>) attributes {dimension_semantics = [#tpu.dimension_semantics<arbitrary>], iteration_bounds = array<i64: 1>, scalar_prefetch = 0 : i64, scratch_operands = 1 : i64, tpu.core_type = #tpu.core_type<tc>, window_params = [{transform_indices = @transform_0, window_bounds = array<i64: 2, 3, 256>}, {pipeline_mode = #tpu.pipeline_mode<synchronous>, transform_indices = @transform_1, window_bounds = array<i64: 3, 64>}, {pipeline_mode = #tpu.pipeline_mode<synchronous>, transform_indices = @transform_2, window_bounds = array<i64: 64, 90>}, {pipeline_mode = #tpu.pipeline_mode<synchronous>, transform_indices = @transform_3, window_bounds = array<i64: 64, 145>}, {pipeline_mode = #tpu.pipeline_mode<synchronous>, transform_indices = @transform_4, window_bounds = array<i64: 90, 145>}, {pipeline_mode = #tpu.pipeline_mode<synchronous>, transform_indices = @transform_5, window_bounds = array<i64: 1, 145>}, {pipeline_mode = #tpu.pipeline_mode<synchronous>, transform_indices = @transform_6, window_bounds = array<i64: 2, 90>}, {pipeline_mode = #tpu.pipeline_mode<synchronous>, transform_indices = @transform_7, window_bounds = array<i64: 2, 145>}, {pipeline_mode = #tpu.pipeline_mode<synchronous>, transform_indices = @transform_8, window_bounds = array<i64: 2, 3>}]} {
    %c0_i32 = arith.constant 0 : i32
    %0 = arith.cmpi eq, %arg0, %c0_i32 : i32
    %1 = arith.extui %0 : i1 to i32
    %c0_i32_0 = arith.constant 0 : i32
    %2 = arith.cmpi ne, %1, %c0_i32_0 : i32
    scf.if %2 {
      %cst_9 = arith.constant 0.000000e+00 : f32
      %11 = vector.broadcast %cst_9 : f32 to vector<2x3xf32>
      %c0_10 = arith.constant 0 : index
      %c0_11 = arith.constant 0 : index
      %12 = vector.load %arg10[%c0_10, %c0_11] : memref<2x3xf32, #tpu.memory_space<vmem>>, vector<2x3xf32>
      tpu.vector_store %arg10[%c0_10, %c0_11], %11 {strides = array<i32>} : memref<2x3xf32, #tpu.memory_space<vmem>>, vector<2x3xf32>,
    } else {
    }
    %c0 = arith.constant 0 : index
    %c0_1 = arith.constant 0 : index
    %3 = vector.load %arg10[%c0, %c0_1] : memref<2x3xf32, #tpu.memory_space<vmem>>, vector<2x3xf32>
    %c0_2 = arith.constant 0 : index
    %c0_3 = arith.constant 0 : index
    %c0_4 = arith.constant 0 : index
    %4 = vector.load %arg1[%c0_2, %c0_3, %c0_4] : memref<2x3x256xf32, #tpu.memory_space<vmem>>, vector<2x3x256xf32>
    %cst = arith.constant dense<0.000000e+00> : vector<2x3xf32>
    %5 = vector.multi_reduction <add>, %4, %cst [2] : vector<2x3x256xf32> to vector<2x3xf32>
    %6 = arith.addf %3, %5 : vector<2x3xf32>
    %c0_5 = arith.constant 0 : index
    %c0_6 = arith.constant 0 : index
    %7 = vector.load %arg10[%c0_5, %c0_6] : memref<2x3xf32, #tpu.memory_space<vmem>>, vector<2x3xf32>
    tpu.vector_store %arg10[%c0_5, %c0_6], %6 {strides = array<i32>} : memref<2x3xf32, #tpu.memory_space<vmem>>, vector<2x3xf32>,
    %c0_i32_7 = arith.constant 0 : i32
    %8 = arith.cmpi eq, %arg0, %c0_i32_7 : i32
    %9 = arith.extui %8 : i1 to i32
    %c0_i32_8 = arith.constant 0 : i32
    %10 = arith.cmpi ne, %9, %c0_i32_8 : i32
    scf.if %10 {
      %c0_9 = arith.constant 0 : index
      %c0_10 = arith.constant 0 : index
      %11 = vector.load %arg10[%c0_9, %c0_10] : memref<2x3xf32, #tpu.memory_space<vmem>>, vector<2x3xf32>
      %cst_11 = arith.constant 3.906250e-03 : f32
      %12 = vector.broadcast %cst_11 : f32 to vector<2x3xf32>
      %13 = arith.mulf %11, %12 : vector<2x3xf32>
      %c0_12 = arith.constant 0 : index
      %c0_13 = arith.constant 0 : index
      %14 = vector.load %arg2[%c0_12, %c0_13] : memref<3x64xf32, #tpu.memory_space<vmem>>, vector<3x64xf32>
      %cst_14 = arith.constant dense<0.000000e+00> : vector<2x64xf32>
      %15 = tpu.matmul %13, %14, %cst_14 {dimension_numbers = #tpu.dot_dimension_numbers<[1], [0], [0], [1], [0, 0, 1, 1], [], []>} : vector<2x3xf32>, vector<3x64xf32>, vector<2x64xf32> -> vector<2x64xf32>
      %c0_15 = arith.constant 0 : index
      %c0_16 = arith.constant 0 : index
      %16 = vector.load %arg3[%c0_15, %c0_16] : memref<64x90xf32, #tpu.memory_space<vmem>>, vector<64x90xf32>
      %cst_17 = arith.constant dense<0.000000e+00> : vector<2x90xf32>
      %17 = tpu.matmul %15, %16, %cst_17 {dimension_numbers = #tpu.dot_dimension_numbers<[1], [0], [0], [1], [0, 0, 1, 1], [], []>} : vector<2x64xf32>, vector<64x90xf32>, vector<2x90xf32> -> vector<2x90xf32>
      %18 = arith.negf %17 : vector<2x90xf32>
      %19 = math.exp %18 : vector<2x90xf32>
      %cst_18 = arith.constant 1.000000e+00 : f32
      %20 = vector.broadcast %cst_18 : f32 to vector<2x90xf32>
      %21 = arith.addf %20, %19 : vector<2x90xf32>
      %22 = arith.divf %20, %21 : vector<2x90xf32>
      %cst_19 = arith.constant 8.000000e+00 : f32
      %23 = vector.broadcast %cst_19 : f32 to vector<2x90xf32>
      %24 = arith.mulf %22, %23 : vector<2x90xf32>
      %c0_20 = arith.constant 0 : index
      %c0_21 = arith.constant 0 : index
      %25 = vector.load %arg7[%c0_20, %c0_21] : memref<2x90xf32, #tpu.memory_space<vmem>>, vector<2x90xf32>
      tpu.vector_store %arg7[%c0_20, %c0_21], %24 {strides = array<i32>} : memref<2x90xf32, #tpu.memory_space<vmem>>, vector<2x90xf32>,
      %c0_22 = arith.constant 0 : index
      %c0_23 = arith.constant 0 : index
      %26 = vector.load %arg4[%c0_22, %c0_23] : memref<64x145xf32, #tpu.memory_space<vmem>>, vector<64x145xf32>
      %cst_24 = arith.constant dense<0.000000e+00> : vector<2x145xf32>
      %27 = tpu.matmul %15, %26, %cst_24 {dimension_numbers = #tpu.dot_dimension_numbers<[1], [0], [0], [1], [0, 0, 1, 1], [], []>} : vector<2x64xf32>, vector<64x145xf32>, vector<2x145xf32> -> vector<2x145xf32>
      %c0_25 = arith.constant 0 : index
      %c0_26 = arith.constant 0 : index
      %28 = vector.load %arg5[%c0_25, %c0_26] : memref<90x145xf32, #tpu.memory_space<vmem>>, vector<90x145xf32>
      %cst_27 = arith.constant dense<0.000000e+00> : vector<2x145xf32>
      %29 = tpu.matmul %24, %28, %cst_27 {dimension_numbers = #tpu.dot_dimension_numbers<[1], [0], [0], [1], [0, 0, 1, 1], [], []>} : vector<2x90xf32>, vector<90x145xf32>, vector<2x145xf32> -> vector<2x145xf32>
      %30 = arith.addf %27, %29 : vector<2x145xf32>
      %c0_28 = arith.constant 0 : index
      %c0_29 = arith.constant 0 : index
      %31 = vector.load %arg6[%c0_28, %c0_29] : memref<1x145xf32, #tpu.memory_space<vmem>>, vector<1x145xf32>
      %32 = vector.broadcast %31 : vector<1x145xf32> to vector<2x145xf32>
      %33 = arith.addf %30, %32 : vector<2x145xf32>
      %c0_30 = arith.constant 0 : index
      %c0_31 = arith.constant 0 : index
      %34 = vector.load %arg8[%c0_30, %c0_31] : memref<2x145xf32, #tpu.memory_space<vmem>>, vector<2x145xf32>
      tpu.vector_store %arg8[%c0_30, %c0_31], %33 {strides = array<i32>} : memref<2x145xf32, #tpu.memory_space<vmem>>, vector<2x145xf32>,
      %35 = vector.extract_strided_slice %33 {offsets = [0, 142], sizes = [2, 3], strides = [1, 1]} : vector<2x145xf32> to vector<2x3xf32>
      %36 = tpu.iota {dimensions = array<i32: 1>} : vector<2x3xi32>
      %c2_i32 = arith.constant 2 : i32
      %37 = vector.broadcast %c2_i32 : i32 to vector<2x3xi32>
      %38 = arith.cmpi slt, %36, %37 : vector<2x3xi32>
      %39 = arith.negf %35 : vector<2x3xf32>
      %40 = math.exp %39 : vector<2x3xf32>
      %cst_32 = arith.constant 1.000000e+00 : f32
      %41 = vector.broadcast %cst_32 : f32 to vector<2x3xf32>
      %42 = arith.addf %41, %40 : vector<2x3xf32>
      %43 = arith.divf %41, %42 : vector<2x3xf32>
      %cst_33 = arith.constant 56.3818626 : f32
      %44 = vector.broadcast %cst_33 : f32 to vector<2x3xf32>
      %45 = arith.mulf %44, %43 : vector<2x3xf32>
      %46 = arith.select %38, %35, %45 : vector<2x3xi1>, vector<2x3xf32>
      %c0_34 = arith.constant 0 : index
      %c0_35 = arith.constant 0 : index
      %47 = vector.load %arg9[%c0_34, %c0_35] : memref<2x3xf32, #tpu.memory_space<vmem>>, vector<2x3xf32>
      tpu.vector_store %arg9[%c0_34, %c0_35], %46 {strides = array<i32>} : memref<2x3xf32, #tpu.memory_space<vmem>>, vector<2x3xf32>,
    } else {
    }
    return
  }
  func.func @transform_0(%arg0: i32) -> (i32, i32, i32) {
    %c0_i32 = arith.constant 0 : i32
    %c0_i32_0 = arith.constant 0 : i32
    %c0_i32_1 = arith.constant 0 : i32
    return %c0_i32, %c0_i32_0, %arg0 : i32, i32, i32
  }
  func.func @transform_1(%arg0: i32) -> (i32, i32) {
    %c0_i32 = arith.constant 0 : i32
    %c0_i32_0 = arith.constant 0 : i32
    %c0_i32_1 = arith.constant 0 : i32
    return %c0_i32, %c0_i32_0 : i32, i32
  }
  func.func @transform_2(%arg0: i32) -> (i32, i32) {
    %c0_i32 = arith.constant 0 : i32
    %c0_i32_0 = arith.constant 0 : i32
    %c0_i32_1 = arith.constant 0 : i32
    return %c0_i32, %c0_i32_0 : i32, i32
  }
  func.func @transform_3(%arg0: i32) -> (i32, i32) {
    %c0_i32 = arith.constant 0 : i32
    %c0_i32_0 = arith.constant 0 : i32
    %c0_i32_1 = arith.constant 0 : i32
    return %c0_i32, %c0_i32_0 : i32, i32
  }
  func.func @transform_4(%arg0: i32) -> (i32, i32) {
    %c0_i32 = arith.constant 0 : i32
    %c0_i32_0 = arith.constant 0 : i32
    %c0_i32_1 = arith.constant 0 : i32
    return %c0_i32, %c0_i32_0 : i32, i32
  }
  func.func @transform_5(%arg0: i32) -> (i32, i32) {
    %c0_i32 = arith.constant 0 : i32
    %c0_i32_0 = arith.constant 0 : i32
    %c0_i32_1 = arith.constant 0 : i32
    return %c0_i32, %c0_i32_0 : i32, i32
  }
  func.func @transform_6(%arg0: i32) -> (i32, i32) {
    %c0_i32 = arith.constant 0 : i32
    %c0_i32_0 = arith.constant 0 : i32
    %c0_i32_1 = arith.constant 0 : i32
    return %c0_i32, %c0_i32_0 : i32, i32
  }
  func.func @transform_7(%arg0: i32) -> (i32, i32) {
    %c0_i32 = arith.constant 0 : i32
    %c0_i32_0 = arith.constant 0 : i32
    %c0_i32_1 = arith.constant 0 : i32
    return %c0_i32, %c0_i32_0 : i32, i32
  }
  func.func @transform_8(%arg0: i32) -> (i32, i32) {
    %c0_i32 = arith.constant 0 : i32
    %c0_i32_0 = arith.constant 0 : i32
    %c0_i32_1 = arith.constant 0 : i32
    return %c0_i32, %c0_i32_0 : i32, i32
  }
}

module attributes {stable_mosaic.version = 11 : i64} {
  func.func @_body_kernel(%arg0: memref<2x82xf32, #tpu.memory_space<vmem>>, %arg1: memref<82x384xf32, #tpu.memory_space<vmem>>, %arg2: memref<1x384xf32, #tpu.memory_space<vmem>>, %arg3: memref<384x90xf32, #tpu.memory_space<vmem>>, %arg4: memref<2x3xf32, #tpu.memory_space<vmem>>, %arg5: memref<2x384xf32, #tpu.memory_space<vmem>>, %arg6: memref<2x60xf32, #tpu.memory_space<vmem>>, %arg7: memref<2x90xf32, #tpu.memory_space<vmem>>) attributes {dimension_semantics = [], scalar_prefetch = 0 : i64, scratch_operands = 0 : i64, tpu.core_type = #tpu.core_type<tc>} {
    %c0 = arith.constant 0 : index
    %c0_0 = arith.constant 0 : index
    %0 = vector.load %arg2[%c0, %c0_0] : memref<1x384xf32, #tpu.memory_space<vmem>>, vector<1x384xf32>
    %c0_1 = arith.constant 0 : index
    %c0_2 = arith.constant 0 : index
    %1 = vector.load %arg0[%c0_1, %c0_2] : memref<2x82xf32, #tpu.memory_space<vmem>>, vector<2x82xf32>
    %c0_3 = arith.constant 0 : index
    %c0_4 = arith.constant 0 : index
    %2 = vector.load %arg1[%c0_3, %c0_4] : memref<82x384xf32, #tpu.memory_space<vmem>>, vector<82x384xf32>
    %cst = arith.constant dense<0.000000e+00> : vector<2x384xf32>
    %3 = tpu.matmul %1, %2, %cst {dimension_numbers = #tpu.dot_dimension_numbers<[1], [0], [0], [1], [0, 0, 1, 1], [], []>} : vector<2x82xf32>, vector<82x384xf32>, vector<2x384xf32> -> vector<2x384xf32>
    %4 = vector.broadcast %0 : vector<1x384xf32> to vector<2x384xf32>
    %5 = arith.addf %4, %3 : vector<2x384xf32>
    %c0_5 = arith.constant 0 : index
    %c0_6 = arith.constant 0 : index
    %6 = vector.load %arg5[%c0_5, %c0_6] : memref<2x384xf32, #tpu.memory_space<vmem>>, vector<2x384xf32>
    tpu.vector_store %arg5[%c0_5, %c0_6], %5 {strides = array<i32>} : memref<2x384xf32, #tpu.memory_space<vmem>>, vector<2x384xf32>,
    %c0_7 = arith.constant 0 : index
    %c0_8 = arith.constant 0 : index
    %7 = vector.load %arg3[%c0_7, %c0_8] : memref<384x90xf32, #tpu.memory_space<vmem>>, vector<384x90xf32>
    %cst_9 = arith.constant dense<0.000000e+00> : vector<2x90xf32>
    %8 = tpu.matmul %5, %7, %cst_9 {dimension_numbers = #tpu.dot_dimension_numbers<[1], [0], [0], [1], [0, 0, 1, 1], [], []>} : vector<2x384xf32>, vector<384x90xf32>, vector<2x90xf32> -> vector<2x90xf32>
    %9 = vector.extract_strided_slice %8 {offsets = [0, 0], sizes = [2, 30], strides = [1, 1]} : vector<2x90xf32> to vector<2x30xf32>
    %10 = vector.extract_strided_slice %8 {offsets = [0, 30], sizes = [2, 30], strides = [1, 1]} : vector<2x90xf32> to vector<2x30xf32>
    %11 = vector.extract_strided_slice %8 {offsets = [0, 60], sizes = [2, 30], strides = [1, 1]} : vector<2x90xf32> to vector<2x30xf32>
    %c0_10 = arith.constant 0 : index
    %c0_11 = arith.constant 0 : index
    %12 = vector.load %arg4[%c0_10, %c0_11] : memref<2x3xf32, #tpu.memory_space<vmem>>, vector<2x1xf32>
    %c0_12 = arith.constant 0 : index
    %c1 = arith.constant 1 : index
    %13 = vector.load %arg4[%c0_12, %c1] : memref<2x3xf32, #tpu.memory_space<vmem>>, vector<2x1xf32>
    %c0_13 = arith.constant 0 : index
    %c2 = arith.constant 2 : index
    %14 = vector.load %arg4[%c0_13, %c2] : memref<2x3xf32, #tpu.memory_space<vmem>>, vector<2x1xf32>
    %15 = vector.broadcast %14 : vector<2x1xf32> to vector<2x30xf32>
    %16 = arith.addf %11, %15 : vector<2x30xf32>
    %cst_14 = arith.constant 9.99999974E-5 : f32
    %17 = vector.broadcast %cst_14 : f32 to vector<2x30xf32>
    %18 = arith.addf %16, %17 : vector<2x30xf32>
    %19 = vector.broadcast %12 : vector<2x1xf32> to vector<2x30xf32>
    %20 = arith.addf %9, %19 : vector<2x30xf32>
    %21 = arith.divf %20, %18 : vector<2x30xf32>
    %cst_15 = arith.constant 5.000000e+03 : f32
    %22 = vector.broadcast %cst_15 : f32 to vector<2x30xf32>
    %23 = arith.mulf %21, %22 : vector<2x30xf32>
    %cst_16 = arith.constant 9.600000e+01 : f32
    %24 = vector.broadcast %cst_16 : f32 to vector<2x30xf32>
    %25 = arith.addf %23, %24 : vector<2x30xf32>
    %26 = vector.broadcast %13 : vector<2x1xf32> to vector<2x30xf32>
    %27 = arith.addf %10, %26 : vector<2x30xf32>
    %28 = arith.divf %27, %18 : vector<2x30xf32>
    %cst_17 = arith.constant 5.000000e+03 : f32
    %29 = vector.broadcast %cst_17 : f32 to vector<2x30xf32>
    %30 = arith.mulf %28, %29 : vector<2x30xf32>
    %cst_18 = arith.constant 1.280000e+02 : f32
    %31 = vector.broadcast %cst_18 : f32 to vector<2x30xf32>
    %32 = arith.addf %30, %31 : vector<2x30xf32>
    %cst_19 = arith.constant 1.920000e+02 : f32
    %33 = vector.broadcast %cst_19 : f32 to vector<2x30xf32>
    %34 = arith.divf %25, %33 : vector<2x30xf32>
    %cst_20 = arith.constant 8.000000e+00 : f32
    %35 = vector.broadcast %cst_20 : f32 to vector<2x30xf32>
    %36 = arith.mulf %34, %35 : vector<2x30xf32>
    %cst_21 = arith.constant 2.560000e+02 : f32
    %37 = vector.broadcast %cst_21 : f32 to vector<2x30xf32>
    %38 = arith.divf %32, %37 : vector<2x30xf32>
    %cst_22 = arith.constant 8.000000e+00 : f32
    %39 = vector.broadcast %cst_22 : f32 to vector<2x30xf32>
    %40 = arith.mulf %38, %39 : vector<2x30xf32>
    %c0_23 = arith.constant 0 : index
    %c0_24 = arith.constant 0 : index
    %41 = vector.load %arg6[%c0_23, %c0_24] : memref<2x60xf32, #tpu.memory_space<vmem>>, vector<2x30xf32>
    tpu.vector_store %arg6[%c0_23, %c0_24], %36 {strides = array<i32>} : memref<2x60xf32, #tpu.memory_space<vmem>>, vector<2x30xf32>,
    %c0_25 = arith.constant 0 : index
    %c30 = arith.constant 30 : index
    %42 = vector.load %arg6[%c0_25, %c30] : memref<2x60xf32, #tpu.memory_space<vmem>>, vector<2x30xf32>
    tpu.vector_store %arg6[%c0_25, %c30], %40 {strides = array<i32>} : memref<2x60xf32, #tpu.memory_space<vmem>>, vector<2x30xf32>,
    %43 = vector.extract_strided_slice %9 {offsets = [0, 0], sizes = [2, 1], strides = [1, 1]} : vector<2x30xf32> to vector<2x1xf32>
    %44 = vector.extract_strided_slice %10 {offsets = [0, 0], sizes = [2, 1], strides = [1, 1]} : vector<2x30xf32> to vector<2x1xf32>
    %45 = vector.extract_strided_slice %11 {offsets = [0, 0], sizes = [2, 1], strides = [1, 1]} : vector<2x30xf32> to vector<2x1xf32>
    %46 = vector.broadcast %43 : vector<2x1xf32> to vector<2x30xf32>
    %47 = arith.subf %9, %46 : vector<2x30xf32>
    %c0_26 = arith.constant 0 : index
    %c0_27 = arith.constant 0 : index
    %48 = vector.load %arg7[%c0_26, %c0_27] : memref<2x90xf32, #tpu.memory_space<vmem>>, vector<2x30xf32>
    tpu.vector_store %arg7[%c0_26, %c0_27], %47 {strides = array<i32>} : memref<2x90xf32, #tpu.memory_space<vmem>>, vector<2x30xf32>,
    %49 = vector.broadcast %44 : vector<2x1xf32> to vector<2x30xf32>
    %50 = arith.subf %10, %49 : vector<2x30xf32>
    %c0_28 = arith.constant 0 : index
    %c30_29 = arith.constant 30 : index
    %51 = vector.load %arg7[%c0_28, %c30_29] : memref<2x90xf32, #tpu.memory_space<vmem>>, vector<2x30xf32>
    tpu.vector_store %arg7[%c0_28, %c30_29], %50 {strides = array<i32>} : memref<2x90xf32, #tpu.memory_space<vmem>>, vector<2x30xf32>,
    %52 = vector.broadcast %45 : vector<2x1xf32> to vector<2x30xf32>
    %53 = arith.subf %11, %52 : vector<2x30xf32>
    %c0_30 = arith.constant 0 : index
    %c60 = arith.constant 60 : index
    %54 = vector.load %arg7[%c0_30, %c60] : memref<2x90xf32, #tpu.memory_space<vmem>>, vector<2x30xf32>
    tpu.vector_store %arg7[%c0_30, %c60], %53 {strides = array<i32>} : memref<2x90xf32, #tpu.memory_space<vmem>>, vector<2x30xf32>,
    return
  }
}

</mosaic_0001>

<bundles_post_ra>
// kernel: model_forward.2
= control target key start
LH: loop header
LB: loop body
LE: loop exit
PB: predicated region body
PF: predicated region fallthrough
CT: control target
= control target key end

     0   :  { %vm41_vm0 = vcmask 1042432   ;;  %vm30_vm1 = vcmask 17408   ;;  %v552_v10 = vmov 0.0   ;;  %vm553_vm2 = vmmov 0   ;;  %s803_s0 = inlined_call_operand.vmem [shape: f32[2,3,256], index: 0, kind: input, shape index: {}]   ;;  %s804_s1 = inlined_call_operand.vmem [shape: f32[3,64], index: 1, kind: input, shape index: {}]   ;;  %s805_s2 = inlined_call_operand.vmem [shape: f32[64,90], index: 2, kind: input, shape index: {}]   ;;  %s806_s3 = inlined_call_operand.vmem [shape: f32[64,145], index: 3, kind: input, shape index: {}]   ;;  %s807_s4 = inlined_call_operand.vmem [shape: f32[90,145], index: 4, kind: input, shape index: {}]   ;;  %s808_s6 = inlined_call_operand.vmem [shape: f32[2,90], index: 6, kind: output, shape index: {0}]   ;;  %s809_s5 = inlined_call_operand.vmem [shape: f32[1,145], index: 5, kind: input, shape index: {}]   ;;  %s810_s7 = inlined_call_operand.vmem [shape: f32[2,145], index: 7, kind: output, shape index: {1}]   ;;  %s811_s8 = inlined_call_operand.vmem [shape: f32[2,3], index: 8, kind: output, shape index: {2}]  }
   0x1   :  { %v33_v0 = vld [vmem:[%s803_s0] sm:$0x77]  ;;  %v34_v1 = vld [vmem:[%s803_s0 + $0x8] sm:$0x77]  ;;  %31 = vst.msk [vmem:[#allocation2] sm:$0x3] %vm30_vm1, %v552_v10  ;;  %514 = vmatprep.subr.mxu0 %v552_v10  ;;  %519 = vmatprep.subr.mxu1 %v552_v10  ;;  %v54_v20 = vlaneseq }
   0x2   :  { %v37_v2 = vcombine.high %v33_v0, %v33_v0  ;;  %v42_v3 = vsel %vm41_vm0, %v33_v0, 0.0  ;;  %v38_v4 = vcombine.high %v34_v1, %v34_v1  ;;  %v47_v6 = vsel %vm41_vm0, %v34_v1, 0.0  ;;  %v75_v11 = vld [vmem:[%s804_s1] sm:$0x7]  ;;  %516 = vmatprep.mubr.msk.f32.mxu0 %vm553_vm2, %v552_v10  ;;  %535 = vmatprep.mubr.msk.f32.mxu1 %vm553_vm2, %v552_v10  ;;  %v160_v12 = vld [vmem:[%s805_s2 + $0x38] sm:$0xff]  ;;  %v159_v13 = vld [vmem:[%s805_s2 + $0x30] sm:$0xff] }
   0x3   :  { %515 = vmatpush3.msk.msra.mxu0 %vm41_vm0, %v75_v11  ;;  %520 = vmatpush3.msra.mxu1 %v160_v12  ;;  %v158_v14 = vld [vmem:[%s805_s2 + $0x28] sm:$0xff]  ;;  %v157_v15 = vld [vmem:[%s805_s2 + $0x20] sm:$0xff]  ;;  %v156_v16 = vld [vmem:[%s805_s2 + $0x18] sm:$0xff]  ;;  %v652_v21 = vand.u32 127, %v54_v20  ;;  %v654_v22 = vshrl.u32 %v54_v20, 7  ;;  %vm64_vm3 = vcmask 1041409  }
   0x4   :  { %v43_v5 = vsel %vm41_vm0, %v37_v2, 0.0  ;;  %v48_v7 = vsel %vm41_vm0, %v38_v4, 0.0  ;;  %521 = vmatprep.subr.mxu1 %v552_v10  ;;  %v155_v17 = vld [vmem:[%s805_s2 + $0x10] sm:$0xff]  ;;  %v154_v18 = vld [vmem:[%s805_s2 + $0x8] sm:$0xff]  ;;  %v153_v19 = vld [vmem:[%s805_s2] sm:$0xff]  ;;  %vm76_vm4 = vcmask 23552  }
   0x5   :  { %v44_v8 = vadd.f32 %v43_v5, %v42_v3  ;;  %v49_v9 = vadd.f32 %v48_v7, %v47_v6  ;;  %522 = vmatpush3.msra.mxu1 %v159_v13  ;;  %v58_v24 = vsub.s32 %v652_v21, %v654_v22  ;;  %v259_v33 = vld [vmem:[%s806_s3 + $0x78] sm:$0xff]  ;;  %vm161_vm5 = vcmask 523264   ;;  %v258_v34 = vld [vmem:[%s806_s3 + $0x70] sm:$0xff]  ;;  %v257_v36 = vld [vmem:[%s806_s3 + $0x68] sm:$0xff] }
   0x6   :  { %523 = vmatprep.subr.mxu1 %v552_v10  ;;  %v256_v37 = vld [vmem:[%s806_s3 + $0x60] sm:$0xff]  ;;  %v255_v39 = vld [vmem:[%s806_s3 + $0x58] sm:$0xff]  ;;  %v254_v40 = vld [vmem:[%s806_s3 + $0x50] sm:$0xff]  ;;  %vm288_vm6 = vcmask 1041408   ;;  %vm242_vm7 = vcmask 730112   ;;  %vm284_vm8 = vcmask 736256  }
   0x7   :  { %45 = vadd.xlane.f32.xlu0 %v44_v8  ;;  %524 = vmatpush3.msra.mxu1 %v158_v14  ;;  %v253_v41 = vld [vmem:[%s806_s3 + $0x48] sm:$0xff]  ;;  %v252_v42 = vld [vmem:[%s806_s3 + $0x40] sm:$0xff]  ;;  %v251_v43 = vld [vmem:[%s806_s3 + $0x38] sm:$0xff]  ;;  %v554_v20 = vmov 1983009808   ;;  %vm462_vm9 = vcmask 134146  }
   0x8   :  { %525 = vmatprep.subr.mxu1 %v552_v10  ;;  %v32_v27 = vld [vmem:[#allocation2] sm:$0x3]  ;;  %v250_v44 = vld [vmem:[%s806_s3 + $0x30] sm:$0xff]  ;;  %v249_v45 = vld [vmem:[%s806_s3 + $0x28] sm:$0xff]  ;;  %vm465_vm11 = vcmp.lt.s32.totalorder %v652_v21, 2 }
   0x9   :  { %526 = vmatpush3.msra.mxu1 %v157_v15  ;;  %v248_v46 = vld [vmem:[%s806_s3 + $0x20] sm:$0xff]  ;;  %v247_v47 = vld [vmem:[%s806_s3 + $0x18] sm:$0xff]  ;;  %v246_v48 = vld [vmem:[%s806_s3 + $0x10] sm:$0xff] }
   0xa   :  { %527 = vmatprep.subr.mxu1 %v552_v10  ;;  %v245_v49 = vld [vmem:[%s806_s3 + $0x8] sm:$0xff]  ;;  %v244_v50 = vld [vmem:[%s806_s3] sm:$0xff]  ;;  %v283_v51 = vld [vmem:[%s807_s4 + $0xb8] sm:$0x3] }
   0xb   :  { %50 = vadd.xlane.f32.xlu0 %v49_v9  ;;  %528 = vmatpush3.msra.mxu1 %v156_v16  ;;  %v282_v52 = vld [vmem:[%s807_s4 + $0xb0] sm:$0x3]  ;;  %v281_v53 = vld [vmem:[%s807_s4 + $0xa8] sm:$0xff]  ;;  %v280_v54 = vld [vmem:[%s807_s4 + $0xa0] sm:$0xff] }
   0xc   :  { %529 = vmatprep.subr.mxu1 %v552_v10  ;;  %498 = vmatprep.subr.msk.mxu0 %vm288_vm6, %v283_v51  ;;  %v279_v55 = vld [vmem:[%s807_s4 + $0x98] sm:$0xff]  ;;  %v278_v56 = vld [vmem:[%s807_s4 + $0x90] sm:$0xff]  ;;  %v277_v57 = vld [vmem:[%s807_s4 + $0x88] sm:$0xff] }
   0xd   :  { %530 = vmatpush3.msra.mxu1 %v155_v17  ;;  %v276_v58 = vld [vmem:[%s807_s4 + $0x80] sm:$0xff]  ;;  %v275_v59 = vld [vmem:[%s807_s4 + $0x78] sm:$0xff]  ;;  %v274_v60 = vld [vmem:[%s807_s4 + $0x70] sm:$0xff] }
   0xe   :  { %531 = vmatprep.subr.mxu1 %v552_v10  ;;  %v273_v61 = vld [vmem:[%s807_s4 + $0x68] sm:$0xff]  ;;  %v272_v62 = vld [vmem:[%s807_s4 + $0x60] sm:$0xff]  ;;  %v271_v63 = vld [vmem:[%s807_s4 + $0x58] sm:$0xff] }
   0xf   :  { %532 = vmatpush3.msra.mxu1 %v154_v18  ;;  %v270_v0 = vld [vmem:[%s807_s4 + $0x50] sm:$0xff]  ;;  %v269_v1 = vld [vmem:[%s807_s4 + $0x48] sm:$0xff]  ;;  %v268_v2 = vld [vmem:[%s807_s4 + $0x40] sm:$0xff]  ;;  %v441_v18 = vsub.s32 0, %v654_v22 }
  0x10   :  { %533 = vmatprep.subr.mxu1 %v552_v10  ;;  %v267_v3 = vld [vmem:[%s807_s4 + $0x38] sm:$0xff]  ;;  %v266_v4 = vld [vmem:[%s807_s4 + $0x30] sm:$0xff]  ;;  %v265_v5 = vld [vmem:[%s807_s4 + $0x28] sm:$0xff] }
  0x11   :  { %534 = vmatpush3.msra.mxu1 %v153_v19  ;;  %v264_v6 = vld [vmem:[%s807_s4 + $0x20] sm:$0xff]  ;;  %v263_v7 = vld [vmem:[%s807_s4 + $0x18] sm:$0xff]  ;;  %v262_v8 = vld [vmem:[%s807_s4 + $0x10] sm:$0xff]  ;;  %v445_v19 = vsub.s32 1, %v654_v22 }
  0x12   :  { %382 = vmatprep.subr.mxu1 %v259_v33  ;;  %v261_v9 = vld [vmem:[%s807_s4 + $0x8] sm:$0xff]  ;;  %vm463_vm10 = vmor %vm462_vm9, %vm288_vm6 }
  0x90   :  { %v46_v23 = vpop.xlane.xlu0 %45 }
  0x91   :  { %v59_v26 = vrot.slane %v46_v23, %v58_v24  ;;  %v455_v23 = vunpack.c.l.s4 %v554_v20 }
  0x94   :  { %v51_v25 = vpop.xlane.xlu0 %50 }
  0x95   :  { %v63_v28 = vrot.slane %v51_v25, %v58_v24  ;;  %v437_v25 = vld [vmem:[%s809_s5] sm:$0x3] }
  0x97   :  { %v65_v29 = vsel %vm64_vm3, %v63_v28, %v59_v26  ;;  %v442_v28 = vrot.slane %v437_v25, %v441_v18 }
  0x98   :  { %v67_v30 = vadd.f32 %v65_v29, %v32_v27  ;;  %v446_v29 = vrot.slane %v437_v25, %v445_v19 }
  0x9a   :  { %69 = vst.msk [vmem:[#allocation2] sm:$0x3] %vm30_vm1, %v67_v30  ;;  %v456_v30 = vunpack.c.0.s8 %v455_v23 }
  0xa1   :  { %v73_v31 = vld [vmem:[#allocation2] sm:$0x3] }
  0xa2   :  { %v74_v32 = vmul.f32 0.00390625, %v73_v31 }
  0xa4   :  { %517 = vmatmul.mubr.msk.f32.vlgmr.msra.gmra.mxu0 %vm76_vm4, %v74_v32 }
  0xa5   :  { %359 = vmatprep.mubr.f32.mxu0 %v552_v10  ;;  %499 = vmatpush1.msk.msra.mxu0 %vm288_vm6, %v282_v52 }
  0xa6   :  { %305 = vmatprep.subr.mxu0 %v281_v53 }
  0xa7   :  { %306 = vmatpush1.msra.mxu0 %v280_v54 }
  0xa8   :  { %307 = vmatprep.subr.mxu0 %v279_v55 }
  0xa9   :  { %308 = vmatpush1.msra.mxu0 %v278_v56 }
  0xaa   :  { %309 = vmatprep.subr.mxu0 %v277_v57 }
  0xab   :  { %310 = vmatpush1.msra.mxu0 %v276_v58 }
  0xac   :  { %311 = vmatprep.subr.mxu0 %v275_v59 }
  0xad   :  { %312 = vmatpush1.msra.mxu0 %v274_v60 }
  0xae   :  { %313 = vmatprep.subr.mxu0 %v273_v61 }
  0xaf   :  { %314 = vmatpush1.msra.mxu0 %v272_v62 }
  0xb0   :  { %315 = vmatprep.subr.mxu0 %v271_v63 }
  0xb1   :  { %316 = vmatpush1.msra.mxu0 %v270_v0 }
  0xb2   :  { %317 = vmatprep.subr.mxu0 %v269_v1 }
  0xb3   :  { %318 = vmatpush1.msra.mxu0 %v268_v2 }
  0xb4   :  { %319 = vmatprep.subr.mxu0 %v267_v3 }
  0xb5   :  { %320 = vmatpush1.msra.mxu0 %v266_v4 }
  0xb6   :  { %321 = vmatprep.subr.mxu0 %v265_v5 }
  0xb7   :  { %322 = vmatpush1.msra.mxu0 %v264_v6 }
  0xb8   :  { %323 = vmatprep.subr.mxu0 %v263_v7 }
  0xb9   :  { %324 = vmatpush1.msra.mxu0 %v262_v8 }
  0xba   :  { %325 = vmatprep.subr.mxu0 %v261_v9 }
 0x164   :  { %v149_v35 = vpop.f32.mrf.mxu0 }
 0x165   :  { %536 = vmatmul.mubr.msk.f32.vlgmr.msra.gmra.mxu1 %vm161_vm5, %v149_v35 }
 0x166   :  { %383 = vmatpush1.msra.mxu1 %v258_v34  ;;  %v518_v38 = vpop.f32.mrf.mxu0  ;;  %430 = vmatprep.mubr.f32.mxu1 %v552_v10  ;;  %v260_v10 = vld [vmem:[%s807_s4] sm:$0xff] }
 0x167   :  { %384 = vmatprep.subr.mxu1 %v257_v36  ;;  %326 = vmatpush1.msra.mxu0 %v260_v10  ;;  %v459_v36 = vsub.s32 %v456_v30, %v654_v22 }
 0x168   :  { %385 = vmatpush1.msra.mxu1 %v256_v37 }
 0x169   :  { %386 = vmatprep.subr.mxu1 %v255_v39 }
 0x16a   :  { %387 = vmatpush1.msra.mxu1 %v254_v40 }
 0x16b   :  { %388 = vmatprep.subr.mxu1 %v253_v41 }
 0x16c   :  { %389 = vmatpush1.msra.mxu1 %v252_v42 }
 0x16d   :  { %390 = vmatprep.subr.mxu1 %v251_v43 }
 0x16e   :  { %391 = vmatpush1.msra.mxu1 %v250_v44 }
 0x16f   :  { %392 = vmatprep.subr.mxu1 %v249_v45 }
 0x170   :  { %393 = vmatpush1.msra.mxu1 %v248_v46 }
 0x171   :  { %394 = vmatprep.subr.mxu1 %v247_v47 }
 0x172   :  { %395 = vmatpush1.msra.mxu1 %v246_v48 }
 0x173   :  { %396 = vmatprep.subr.mxu1 %v245_v49 }
 0x174   :  { %397 = vmatpush1.msra.mxu1 %v244_v50 }
 0x175   :  { %501 = vmatmul.mubr.msk.f32.vlgmr.msra.gmra.mxu1 %vm161_vm5, %v149_v35 }
 0x225   :  { %v231_v11 = vpop.f32.mrf.mxu1 }
 0x226   :  { %v497_v12 = vmul.f32 -1.442695, %v231_v11 }
 0x227   :  { %v537_v13 = vpop.f32.mrf.mxu1 }
 0x228   :  { %544 = vpow2.f32 %v497_v12 }
 0x235   :  { %v545_v14 = vpop.eup %544  ;;  %v432_v24 = vpop.f32.mrf.mxu1 }
 0x236   :  { %v238_v15 = vadd.f32 1.0, %v545_v14 }
 0x237   :  { %v434_v31 = vpop.f32.mrf.mxu1 }
 0x238   :  { %546 = vrcp.f32 %v238_v15 }
 0x245   :  { %v547_v16 = vpop.eup %546 }
 0x246   :  { %v241_v17 = vmul.f32 8.0, %v547_v16 }
 0x248   :  { %243 = vst.msk [vmem:[%s808_s6] sm:$0x3] %vm242_vm7, %v241_v17  ;;  %500 = vmatmul.mubr.msk.f32.vlgmr.msra.gmra.mxu0 %vm284_vm8, %v241_v17  ;;  %s555_s6 = smov 114  }
 0x308   :  { %v361_v26 = vpop.f32.mrf.mxu0 }
 0x309   :  { %v433_v27 = vadd.f32 %v432_v24, %v361_v26 }
 0x30a   :  { %v363_v32 = vpop.f32.mrf.mxu0 }
 0x30b   :  { %v435_v33 = vadd.f32 %v434_v31, %v363_v32  ;;  %v449_v34 = vadd.f32 %v442_v28, %v433_v27 }
 0x30d   :  { %v450_v35 = vadd.f32 %v446_v29, %v435_v33 }
 0x30f   :  { %v453_v37 = vcombine.low %v449_v34, %v450_v35  ;;  %v502_v38 = vmul.f32 -1.442695, %v450_v35  ;;  %473 = vrot.lane.b32.xlu1 %v450_v35, %s555_s6 }
 0x311   :  { %v460_v39 = vrot.slane %v453_v37, %v459_v36  ;;  %548 = vpow2.f32 %v502_v38 }
 0x313   :  { %464 = vst.msk [vmem:[%s810_s7] sm:$0xf] %vm463_vm10, %v460_v39 }
 0x31e   :  { %v549_v40 = vpop.eup %548 }
 0x31f   :  { %v469_v41 = vadd.f32 1.0, %v549_v40 }
 0x321   :  { %550 = vrcp.f32 %v469_v41 }
 0x32e   :  { %v551_v42 = vpop.eup %550 }
 0x32f   :  { %v472_v43 = vmul.f32 56.381863, %v551_v42 }
 0x331   :  { %477 = vrot.lane.b32.xlu1 %v472_v43, %s555_s6 }
 0x381   :  { %v474_v44 = vpop.permute.xlu1 %473 }
 0x3a3   :  { %v478_v22 = vpop.permute.xlu1 %477 }
 0x3a4   :  { %v480_v45 = vsel %vm465_vm11, %v474_v44, %v478_v22 }
 0x3a5   :  { %481 = vst.msk [vmem:[%s811_s8] sm:$0x3] %vm30_vm1, %v480_v45 }

// kernel: model_forward.3
= control target key start
LH: loop header
LB: loop body
LE: loop exit
PB: predicated region body
PF: predicated region fallthrough
CT: control target
= control target key end

     0   :  { %vm62_vm0 = vcmask 1041408   ;;  %v664_v3 = vmov 0.0   ;;  %vm665_vm1 = vmmov 0   ;;  %vm58_vm2 = vcmask 670720   ;;  %s671_s23 = smov 68   ;;  %s1021_s1 = inlined_call_operand.vmem [shape: f32[82,384], index: 1, kind: input, shape index: {}]   ;;  %s1022_s0 = inlined_call_operand.vmem [shape: f32[2,82], index: 0, kind: input, shape index: {}]   ;;  %s1023_s3 = inlined_call_operand.vmem [shape: f32[384,90], index: 3, kind: input, shape index: {}]   ;;  %s1024_s4 = inlined_call_operand.vmem [shape: f32[2,3], index: 4, kind: input, shape index: {}]   ;;  %s1025_s2 = inlined_call_operand.vmem [shape: f32[1,384], index: 2, kind: input, shape index: {}]   ;;  %s1026_s5 = inlined_call_operand.vmem [shape: f32[2,384], index: 5, kind: output, shape index: {0}]   ;;  %s1027_s7 = inlined_call_operand.vmem [shape: f32[2,90], index: 7, kind: output, shape index: {2}]   ;;  %s1028_s6 = inlined_call_operand.vmem [shape: f32[2,60], index: 6, kind: output, shape index: {1}]  }
   0x1   :  { %v56_v0 = vld [vmem:[%s1021_s1 + $0xf8] sm:$0x3]  ;;  %v55_v1 = vld [vmem:[%s1021_s1 + $0xf0] sm:$0x3]  ;;  %v53_v2 = vld [vmem:[%s1021_s1 + $0xe0] sm:$0xff]  ;;  %585 = vmatprep.subr.mxu1 %v664_v3  ;;  %136 = vmatprep.mubr.f32.mxu0 %v664_v3  ;;  %vm480_vm3 = vcmask 238592  }
   0x2   :  { %516 = vmatprep.subr.msk.mxu0 %vm62_vm0, %v56_v0  ;;  %v52_v4 = vld [vmem:[%s1021_s1 + $0xd8] sm:$0xff]  ;;  %607 = vmatprep.mubr.msk.f32.mxu1 %vm665_vm1, %v664_v3  ;;  %v50_v5 = vld [vmem:[%s1021_s1 + $0xc8] sm:$0xff]  ;;  %v57_v6 = vld [vmem:[%s1021_s1 + $0x100] sm:$0x3]  ;;  %vm482_vm4 = vcmask 484592   ;;  %vm502_vm5 = vcmask 730592  }
   0x3   :  { %517 = vmatpush1.msk.msra.mxu0 %vm62_vm0, %v55_v1  ;;  %v49_v7 = vld [vmem:[%s1021_s1 + $0xc0] sm:$0xff]  ;;  %586 = vmatpush3.msk.msra.mxu1 %vm62_vm0, %v57_v6  ;;  %v54_v8 = vld [vmem:[%s1021_s1 + $0xe8] sm:$0xff]  ;;  %v47_v9 = vld [vmem:[%s1021_s1 + $0xb0] sm:$0xff] }
   0x4   :  { %84 = vmatprep.subr.mxu0 %v53_v2  ;;  %587 = vmatprep.subr.mxu1 %v664_v3  ;;  %v51_v10 = vld [vmem:[%s1021_s1 + $0xd0] sm:$0xff]  ;;  %v46_v11 = vld [vmem:[%s1021_s1 + $0xa8] sm:$0xff]  ;;  %v44_v12 = vld [vmem:[%s1021_s1 + $0x98] sm:$0xff] }
   0x5   :  { %85 = vmatpush1.msra.mxu0 %v52_v4  ;;  %588 = vmatpush3.msra.mxu1 %v54_v8  ;;  %v48_v13 = vld [vmem:[%s1021_s1 + $0xb8] sm:$0xff]  ;;  %v43_v14 = vld [vmem:[%s1021_s1 + $0x90] sm:$0xff]  ;;  %v41_v15 = vld [vmem:[%s1021_s1 + $0x80] sm:$0xff] }
   0x6   :  { %86 = vmatprep.subr.mxu0 %v50_v5  ;;  %589 = vmatprep.subr.mxu1 %v664_v3  ;;  %v45_v16 = vld [vmem:[%s1021_s1 + $0xa0] sm:$0xff]  ;;  %v40_v17 = vld [vmem:[%s1021_s1 + $0x78] sm:$0xff]  ;;  %v38_v18 = vld [vmem:[%s1021_s1 + $0x68] sm:$0xff] }
   0x7   :  { %87 = vmatpush1.msra.mxu0 %v49_v7  ;;  %590 = vmatpush3.msra.mxu1 %v51_v10  ;;  %v42_v19 = vld [vmem:[%s1021_s1 + $0x88] sm:$0xff]  ;;  %v37_v20 = vld [vmem:[%s1021_s1 + $0x60] sm:$0xff]  ;;  %v35_v21 = vld [vmem:[%s1021_s1 + $0x50] sm:$0xff] }
   0x8   :  { %88 = vmatprep.subr.mxu0 %v47_v9  ;;  %591 = vmatprep.subr.mxu1 %v664_v3  ;;  %v39_v22 = vld [vmem:[%s1021_s1 + $0x70] sm:$0xff]  ;;  %v34_v23 = vld [vmem:[%s1021_s1 + $0x48] sm:$0xff]  ;;  %v32_v24 = vld [vmem:[%s1021_s1 + $0x38] sm:$0xff] }
   0x9   :  { %89 = vmatpush1.msra.mxu0 %v46_v11  ;;  %592 = vmatpush3.msra.mxu1 %v48_v13  ;;  %v36_v25 = vld [vmem:[%s1021_s1 + $0x58] sm:$0xff]  ;;  %v31_v26 = vld [vmem:[%s1021_s1 + $0x30] sm:$0xff]  ;;  %v29_v27 = vld [vmem:[%s1021_s1 + $0x20] sm:$0xff] }
   0xa   :  { %90 = vmatprep.subr.mxu0 %v44_v12  ;;  %593 = vmatprep.subr.mxu1 %v664_v3  ;;  %v33_v28 = vld [vmem:[%s1021_s1 + $0x40] sm:$0xff]  ;;  %v28_v29 = vld [vmem:[%s1021_s1 + $0x18] sm:$0xff]  ;;  %v26_v30 = vld [vmem:[%s1021_s1 + $0x8] sm:$0xff] }
   0xb   :  { %91 = vmatpush1.msra.mxu0 %v43_v14  ;;  %594 = vmatpush3.msra.mxu1 %v45_v16  ;;  %v30_v31 = vld [vmem:[%s1021_s1 + $0x28] sm:$0xff]  ;;  %v25_v32 = vld [vmem:[%s1021_s1] sm:$0xff]  ;;  %v27_v34 = vld [vmem:[%s1021_s1 + $0x10] sm:$0xff] }
   0xc   :  { %92 = vmatprep.subr.mxu0 %v41_v15  ;;  %595 = vmatprep.subr.mxu1 %v664_v3  ;;  %v24_v33 = vld [vmem:[%s1022_s0] sm:$0x3]  ;;  %v284_v35 = vld [vmem:[%s1023_s3 + $0xf8] sm:$0xff]  ;;  %v283_v37 = vld [vmem:[%s1023_s3 + $0xf0] sm:$0xff] }
   0xd   :  { %93 = vmatpush1.msra.mxu0 %v40_v17  ;;  %596 = vmatpush3.msra.mxu1 %v42_v19  ;;  %v268_v36 = vld [vmem:[%s1023_s3 + $0x78] sm:$0xff]  ;;  %v267_v39 = vld [vmem:[%s1023_s3 + $0x70] sm:$0xff]  ;;  %v282_v40 = vld [vmem:[%s1023_s3 + $0xe8] sm:$0xff] }
   0xe   :  { %94 = vmatprep.subr.mxu0 %v38_v18  ;;  %597 = vmatprep.subr.mxu1 %v664_v3  ;;  %v300_v38 = vld [vmem:[%s1023_s3 + $0x178] sm:$0xff]  ;;  %v299_v41 = vld [vmem:[%s1023_s3 + $0x170] sm:$0xff]  ;;  %v266_v42 = vld [vmem:[%s1023_s3 + $0x68] sm:$0xff] }
   0xf   :  { %95 = vmatpush1.msra.mxu0 %v37_v20  ;;  %598 = vmatpush3.msra.mxu1 %v39_v22  ;;  %v281_v43 = vld [vmem:[%s1023_s3 + $0xe0] sm:$0xff]  ;;  %v298_v44 = vld [vmem:[%s1023_s3 + $0x168] sm:$0xff]  ;;  %v280_v46 = vld [vmem:[%s1023_s3 + $0xd8] sm:$0xff]  ;;  %v666_v20 = vmov 2   ;;  %v214_v22 = vlaneseq }
  0x10   :  { %96 = vmatprep.subr.mxu0 %v35_v21  ;;  %599 = vmatprep.subr.mxu1 %v664_v3  ;;  %v265_v45 = vld [vmem:[%s1023_s3 + $0x60] sm:$0xff]  ;;  %v264_v48 = vld [vmem:[%s1023_s3 + $0x58] sm:$0xff]  ;;  %v279_v49 = vld [vmem:[%s1023_s3 + $0xd0] sm:$0xff] }
  0x11   :  { %97 = vmatpush1.msra.mxu0 %v34_v23  ;;  %600 = vmatpush3.msra.mxu1 %v36_v25  ;;  %v297_v47 = vld [vmem:[%s1023_s3 + $0x160] sm:$0xff]  ;;  %v296_v50 = vld [vmem:[%s1023_s3 + $0x158] sm:$0xff]  ;;  %v263_v51 = vld [vmem:[%s1023_s3 + $0x50] sm:$0xff]  ;;  %v215_v23 = vshrl.u32 %v214_v22, 7 }
  0x12   :  { %98 = vmatprep.subr.mxu0 %v32_v24  ;;  %601 = vmatprep.subr.mxu1 %v664_v3  ;;  %v278_v52 = vld [vmem:[%s1023_s3 + $0xc8] sm:$0xff]  ;;  %v295_v53 = vld [vmem:[%s1023_s3 + $0x150] sm:$0xff]  ;;  %v277_v55 = vld [vmem:[%s1023_s3 + $0xc0] sm:$0xff]  ;;  %v667_v24 = vmov 1983009808  }
  0x13   :  { %99 = vmatpush1.msra.mxu0 %v31_v26  ;;  %602 = vmatpush3.msra.mxu1 %v33_v28  ;;  %v262_v54 = vld [vmem:[%s1023_s3 + $0x48] sm:$0xff]  ;;  %v261_v57 = vld [vmem:[%s1023_s3 + $0x40] sm:$0xff]  ;;  %v276_v58 = vld [vmem:[%s1023_s3 + $0xb8] sm:$0xff]  ;;  %v237_v25 = vunpack.c.l.s4 %v667_v24  ;;  %v224_v26 = vsub.s32 2, %v215_v23  ;;  %v220_v28 = vsub.s32 1, %v215_v23 }
  0x14   :  { %100 = vmatprep.subr.mxu0 %v29_v27  ;;  %603 = vmatprep.subr.mxu1 %v664_v3  ;;  %v294_v56 = vld [vmem:[%s1023_s3 + $0x148] sm:$0xff]  ;;  %v293_v59 = vld [vmem:[%s1023_s3 + $0x140] sm:$0xff]  ;;  %v260_v60 = vld [vmem:[%s1023_s3 + $0x38] sm:$0xff]  ;;  %v216_v27 = vsub.s32 0, %v215_v23 }
  0x15   :  { %101 = vmatpush1.msra.mxu0 %v28_v29  ;;  %604 = vmatpush3.msra.mxu1 %v30_v31  ;;  %v275_v61 = vld [vmem:[%s1023_s3 + $0xb0] sm:$0xff]  ;;  %v292_v62 = vld [vmem:[%s1023_s3 + $0x138] sm:$0xff]  ;;  %v274_v0 = vld [vmem:[%s1023_s3 + $0xa8] sm:$0xff]  ;;  %v238_v29 = vunpack.c.0.s8 %v237_v25 }
  0x16   :  { %102 = vmatprep.subr.mxu0 %v26_v30  ;;  %605 = vmatprep.subr.mxu1 %v664_v3  ;;  %v259_v63 = vld [vmem:[%s1023_s3 + $0x30] sm:$0xff]  ;;  %v258_v2 = vld [vmem:[%s1023_s3 + $0x28] sm:$0xff]  ;;  %v273_v4 = vld [vmem:[%s1023_s3 + $0xa0] sm:$0xff] }
  0x17   :  { %103 = vmatpush1.msra.mxu0 %v25_v32  ;;  %606 = vmatpush3.msra.mxu1 %v27_v34  ;;  %v291_v1 = vld [vmem:[%s1023_s3 + $0x130] sm:$0xff]  ;;  %v290_v5 = vld [vmem:[%s1023_s3 + $0x128] sm:$0xff]  ;;  %v257_v6 = vld [vmem:[%s1023_s3 + $0x20] sm:$0xff]  ;;  %v241_v34 = vsub.s32 %v238_v29, %v215_v23 }
  0x18   :  { %518 = vmatmul.mubr.msk.f32.vlgmr.msra.gmra.mxu0 %vm58_vm2, %v24_v33  ;;  %608 = vmatmul.mubr.msk.f32.vlgmr.msra.gmra.mxu1 %vm58_vm2, %v24_v33  ;;  %v272_v7 = vld [vmem:[%s1023_s3 + $0x98] sm:$0xff]  ;;  %v289_v8 = vld [vmem:[%s1023_s3 + $0x120] sm:$0xff]  ;;  %v271_v10 = vld [vmem:[%s1023_s3 + $0x90] sm:$0xff] }
  0x19   :  { %533 = vmatprep.subr.mxu0 %v284_v35  ;;  %610 = vmatprep.subr.mxu1 %v664_v3  ;;  %v256_v9 = vld [vmem:[%s1023_s3 + $0x18] sm:$0xff]  ;;  %v255_v11 = vld [vmem:[%s1023_s3 + $0x10] sm:$0xff]  ;;  %v270_v13 = vld [vmem:[%s1023_s3 + $0x88] sm:$0xff] }
  0x1a   :  { %534 = vmatpush3.msra.mxu0 %v268_v36  ;;  %611 = vmatpush3.msra.mxu1 %v300_v38  ;;  %v288_v12 = vld [vmem:[%s1023_s3 + $0x118] sm:$0xff]  ;;  %v254_v14 = vld [vmem:[%s1023_s3 + $0x8] sm:$0xff]  ;;  %v287_v15 = vld [vmem:[%s1023_s3 + $0x110] sm:$0xff] }
  0x1b   :  { %535 = vmatprep.subr.mxu0 %v283_v37  ;;  %612 = vmatprep.subr.mxu1 %v664_v3  ;;  %v269_v16 = vld [vmem:[%s1023_s3 + $0x80] sm:$0xff]  ;;  %v286_v18 = vld [vmem:[%s1023_s3 + $0x108] sm:$0xff] }
  0x1c   :  { %536 = vmatpush3.msra.mxu0 %v267_v39  ;;  %613 = vmatpush3.msra.mxu1 %v299_v41  ;;  %v253_v17 = vld [vmem:[%s1023_s3] sm:$0xff] }
  0x1d   :  { %537 = vmatprep.subr.mxu0 %v282_v40  ;;  %614 = vmatprep.subr.mxu1 %v664_v3  ;;  %v285_v19 = vld [vmem:[%s1023_s3 + $0x100] sm:$0xff] }
  0x1e   :  { %538 = vmatpush3.msra.mxu0 %v266_v42  ;;  %615 = vmatpush3.msra.mxu1 %v298_v44  ;;  %v441_v21 = vld [vmem:[%s1024_s4] sm:$0x3]  ;;  %s670_s4 = smov 98  }
  0x1f   :  { %539 = vmatprep.subr.mxu0 %v281_v43  ;;  %616 = vmatprep.subr.mxu1 %v664_v3 }
  0x20   :  { %540 = vmatpush3.msra.mxu0 %v265_v45  ;;  %617 = vmatpush3.msra.mxu1 %v297_v47  ;;  %v668_v45 = vmov 0  }
  0x21   :  { %541 = vmatprep.subr.mxu0 %v280_v46  ;;  %618 = vmatprep.subr.mxu1 %v664_v3  ;;  %v669_v46 = vmov 1  }
  0x22   :  { %542 = vmatpush3.msra.mxu0 %v264_v48  ;;  %619 = vmatpush3.msra.mxu1 %v296_v50 }
  0x23   :  { %543 = vmatprep.subr.mxu0 %v279_v49  ;;  %620 = vmatprep.subr.mxu1 %v664_v3 }
  0x24   :  { %544 = vmatpush3.msra.mxu0 %v263_v51  ;;  %621 = vmatpush3.msra.mxu1 %v295_v53 }
  0x25   :  { %545 = vmatprep.subr.mxu0 %v278_v52  ;;  %622 = vmatprep.subr.mxu1 %v664_v3 }
  0x26   :  { %546 = vmatpush3.msra.mxu0 %v262_v54  ;;  %623 = vmatpush3.msra.mxu1 %v294_v56  ;;  %v672_v56 = vmov 60  }
  0x27   :  { %547 = vmatprep.subr.mxu0 %v277_v55  ;;  %624 = vmatprep.subr.mxu1 %v664_v3 }
  0x28   :  { %548 = vmatpush3.msra.mxu0 %v261_v57  ;;  %625 = vmatpush3.msra.mxu1 %v293_v59  ;;  %v673_v57 = vmov 30  }
  0x29   :  { %549 = vmatprep.subr.mxu0 %v276_v58  ;;  %626 = vmatprep.subr.mxu1 %v664_v3 }
  0x2a   :  { %550 = vmatpush3.msra.mxu0 %v260_v60  ;;  %627 = vmatpush3.msra.mxu1 %v292_v62 }
  0x2b   :  { %551 = vmatprep.subr.mxu0 %v275_v61  ;;  %628 = vmatprep.subr.mxu1 %v664_v3 }
  0x2c   :  { %552 = vmatpush3.msra.mxu0 %v259_v63  ;;  %629 = vmatpush3.msra.mxu1 %v291_v1 }
  0x2d   :  { %553 = vmatprep.subr.mxu0 %v274_v0  ;;  %630 = vmatprep.subr.mxu1 %v664_v3 }
  0x2e   :  { %554 = vmatpush3.msra.mxu0 %v258_v2  ;;  %631 = vmatpush3.msra.mxu1 %v290_v5 }
  0x2f   :  { %555 = vmatprep.subr.mxu0 %v273_v4  ;;  %632 = vmatprep.subr.mxu1 %v664_v3 }
  0x30   :  { %556 = vmatpush3.msra.mxu0 %v257_v6  ;;  %633 = vmatpush3.msra.mxu1 %v289_v8 }
  0x31   :  { %557 = vmatprep.subr.mxu0 %v272_v7  ;;  %634 = vmatprep.subr.mxu1 %v664_v3 }
  0x32   :  { %558 = vmatpush3.msra.mxu0 %v256_v9  ;;  %642 = vmatprep.mubr.msk.f32.mxu1 %vm665_vm1, %v664_v3 }
  0x33   :  { %559 = vmatprep.subr.mxu0 %v271_v10  ;;  %635 = vmatpush3.msra.mxu1 %v288_v12 }
  0x34   :  { %560 = vmatpush3.msra.mxu0 %v255_v11  ;;  %636 = vmatprep.subr.mxu1 %v664_v3 }
  0x35   :  { %561 = vmatprep.subr.mxu0 %v270_v13  ;;  %637 = vmatpush3.msra.mxu1 %v287_v15 }
  0x36   :  { %562 = vmatpush3.msra.mxu0 %v254_v14  ;;  %638 = vmatprep.subr.mxu1 %v664_v3 }
  0x37   :  { %563 = vmatprep.subr.mxu0 %v269_v16  ;;  %639 = vmatpush3.msra.mxu1 %v286_v18 }
  0x38   :  { %564 = vmatpush3.msra.mxu0 %v253_v17  ;;  %640 = vmatprep.subr.mxu1 %v664_v3  ;;  %v23_v3 = vld [vmem:[%s1025_s2] sm:$0x7] }
  0x39   :  { %641 = vmatpush3.msra.mxu1 %v285_v19  ;;  %655 = vset.pattern.permute.xlu0 %v666_v20  ;;  %v225_v30 = vrot.slane %v23_v3, %v224_v26  ;;  %v217_v31 = vrot.slane %v23_v3, %v216_v27  ;;  %v221_v32 = vrot.slane %v23_v3, %v220_v28 }
  0x3a   :  { %444 = vperm.xlu0 %655, %v441_v21   ;;  %656 = vset.pattern.permute.xlu1 %v668_v45 }
  0x3e   :  { %657 = vset.pattern.permute.xlu0 %v669_v46 }
  0xb5   :  { %v445_v52 = vpop.permute.xlu0 %444 }
  0xd8   :  { %v138_v33 = vpop.f32.mrf.mxu0  ;;  %v209_v35 = vpop.f32.mrf.mxu1 }
  0xd9   :  { %v231_v37 = vadd.f32 %v225_v30, %v209_v35  ;;  %v229_v38 = vadd.f32 %v217_v31, %v138_v33 }
  0xda   :  { %v140_v36 = vpop.f32.mrf.mxu0  ;;  %v609_v40 = vpop.f32.mrf.mxu1 }
  0xdb   :  { %v230_v39 = vadd.f32 %v221_v32, %v140_v36  ;;  %643 = vmatmul.mubr.f32.vlgmr.msra.gmra.mxu1 %v231_v37  ;;  %v249_v42 = vrot.slane %v231_v37, %v241_v34 }
  0xdd   :  { %v235_v41 = vcombine.low %v229_v38, %v230_v39  ;;  %365 = vmatprep.mubr.f32.mxu0 %v230_v39 }
  0xde   :  { %366 = vmatmul.mubr.f32.vlgmr.msra.gmra.mxu0 %v229_v38 }
  0xdf   :  { %v242_v43 = vrot.slane %v235_v41, %v241_v34 }
  0xe1   :  { %v250_v44 = vcombine.low %v242_v43, %v249_v42 }
  0xe3   :  { %252 = vst [vmem:[%s1026_s5] sm:$0x3f] %v250_v44 }
 0x19b   :  { %v437_v47 = vpop.f32.mrf.mxu1 }
 0x19d   :  { %v644_v49 = vpop.f32.mrf.mxu1 }
 0x19e   :  { %v565_v48 = vpop.f32.mrf.mxu0 }
 0x1a0   :  { %v566_v50 = vpop.f32.mrf.mxu0 }
 0x1a1   :  { %v567_v51 = vadd.f32 %v566_v50, %v565_v48 }
 0x1a3   :  { %v438_v53 = vadd.f32 %v567_v51, %v437_v47 }
 0x1a5   :  { %v447_v54 = vadd.f32 %v445_v52, %v438_v53 }
 0x1a7   :  { %v448_v55 = vadd.f32 0.0001, %v447_v54 }
 0x1a9   :  { %467 = vrot.lane.b32.xlu1 %v448_v55, %s670_s4  ;;  %455 = vrot.lane.b32.xlu0 %v448_v55, %s671_s23 }
 0x1ad   :  { %450 = vperm.xlu1 %656, %v441_v21   ;;  %463 = vperm.xlu0 %657, %v441_v21  }
 0x1b1   :  { %486 = vperm.xlu1 %656, %v438_v53   ;;  %659 = vset.pattern.permute.xlu0 %v672_v56 }
 0x1b2   :  { %498 = vperm.xlu0 %659, %v438_v53  }
 0x1b5   :  { %658 = vset.pattern.permute.xlu1 %v673_v57 }
 0x1b6   :  { %492 = vperm.xlu1 %658, %v438_v53  }
 0x21b   :  { %v468_v58 = vpop.permute.xlu1 %467  ;;  %v456_v59 = vpop.permute.xlu0 %455 }
 0x21c   :  { %660 = vrcp.f32 %v468_v58 }
 0x21d   :  { %662 = vrcp.f32 %v456_v59 }
 0x228   :  { %v451_v60 = vpop.permute.xlu1 %450  ;;  %v464_v61 = vpop.permute.xlu0 %463 }
 0x229   :  { %v661_v62 = vpop.eup %660  ;;  %v453_v63 = vadd.f32 %v451_v60, %v438_v53  ;;  %v466_v0 = vadd.f32 %v464_v61, %v438_v53 }
 0x22a   :  { %v663_v1 = vpop.eup %662 }
 0x22b   :  { %v459_v2 = vmul.f32 %v663_v1, %v453_v63  ;;  %v471_v4 = vmul.f32 %v661_v62, %v466_v0 }
 0x22c   :  { %v487_v5 = vpop.permute.xlu1 %486 }
 0x22d   :  { %v460_v6 = vmul.f32 5000.0, %v459_v2  ;;  %v472_v7 = vmul.f32 5000.0, %v471_v4  ;;  %v489_v8 = vsub.f32 %v438_v53, %v487_v5  ;;  %v499_v11 = vpop.permute.xlu0 %498 }
 0x22e   :  { %v501_v18 = vsub.f32 %v438_v53, %v499_v11 }
 0x22f   :  { %v461_v9 = vadd.f32 96.0, %v460_v6  ;;  %v473_v10 = vadd.f32 128.0, %v472_v7  ;;  %490 = vst.msk [vmem:[%s1027_s7] sm:$0x3] %vm480_vm3, %v489_v8 }
 0x231   :  { %v475_v12 = vmul.f32 0.0052083335, %v461_v9  ;;  %v478_v13 = vmul.f32 0.00390625, %v473_v10  ;;  %v493_v14 = vpop.permute.xlu1 %492 }
 0x232   :  { %v495_v15 = vsub.f32 %v438_v53, %v493_v14 }
 0x233   :  { %v476_v16 = vmul.f32 8.0, %v475_v12  ;;  %v479_v17 = vmul.f32 8.0, %v478_v13 }
 0x234   :  { %496 = vst.msk [vmem:[%s1027_s7] sm:$0x3] %vm482_vm4, %v495_v15 }
 0x235   :  { %481 = vst.msk [vmem:[%s1028_s6] sm:$0x3] %vm480_vm3, %v476_v16 }
 0x236   :  { %503 = vst.msk [vmem:[%s1027_s7] sm:$0x3] %vm502_vm5, %v501_v18 }
 0x237   :  { %483 = vst.msk [vmem:[%s1028_s6] sm:$0x3] %vm482_vm4, %v479_v17 }

</bundles_post_ra>
